<compile_context>
chip_gen: v6e
topology: v6e:2x2x1
jax: 0.10.0
libtpu: 0.0.40
codegen_flags: <defaults>
</compile_context>

<pallas_src>
import jax
import jax.numpy as jnp
from jax.experimental import pallas as pl
from jax.experimental.pallas import tpu as pltpu


# ---------------------------------------------------------------------------
# Helpers
# ---------------------------------------------------------------------------

def _cdiv(a, b):
    return -(-a // b)


def _round_up(x, m):
    return _cdiv(x, m) * m


def _sublane_multiple(dtype) -> int:
    """Minimum sublane tile for a dtype: f32 -> 8, bf16 -> 16, int8/fp8 -> 32."""
    return {4: 8, 2: 16, 1: 32}.get(jnp.dtype(dtype).itemsize, 8)


def _tile_bytes(shape, dtype) -> int:
    """Layout-aware VMEM footprint of one block.

    The minor-most dim pads to a multiple of 128 lanes, the second-minor dim pads
    to the dtype's sublane multiple (8/16/32); leading dims are dense.
    """
    itemsize = jnp.dtype(dtype).itemsize
    sub = _sublane_multiple(dtype)
    dims = [int(d) for d in shape]
    if not dims:
        return itemsize
    if len(dims) == 1:
        return _round_up(dims[0], 128) * sub * itemsize
    lead = 1
    for d in dims[:-2]:
        lead *= d
    return lead * _round_up(dims[-2], sub) * _round_up(dims[-1], 128) * itemsize


def _vmem_limits():
    """(scoped_vmem_limit_bytes, block_budget_bytes) for the current chip.

    Leaves headroom for Mosaic internal scratch: ~40 MiB on 64 MiB-VMEM parts
    (v7x), ~96 MiB on 128 MiB parts (v4/v5e/v6e).
    """
    cap = None
    try:
        cap = int(pltpu.get_tpu_info().vmem_capacity_bytes)
    except Exception:
        cap = None
    if cap is None:
        kind = ""
        try:
            kind = jax.devices()[0].device_kind.lower()
        except Exception:
            pass
        if "v7" in kind:
            cap = 64 * 1024 * 1024
        elif any(t in kind for t in ("v4", "v5", "v6")):
            cap = 128 * 1024 * 1024
        else:
            cap = 64 * 1024 * 1024          # unknown generation: stay conservative
    if cap <= 64 * 1024 * 1024:
        limit = 40 * 1024 * 1024
    else:
        limit = 96 * 1024 * 1024
    budget = max(limit - 6 * 1024 * 1024, 16 * 1024 * 1024)
    return limit, budget


def _flatten_features(xs):
    n = xs.shape[0]
    d = 1
    for s in xs.shape[1:]:
        d *= int(s)
    d = max(d, 1)
    return xs.reshape(n, d), d


# ---------------------------------------------------------------------------
# Kernel bodies
# ---------------------------------------------------------------------------

def _diffs_blocked_kernel(test_ref, train_ref, out_ref):
    # test_ref : (tm, D), train_ref : (tn, D), out_ref : (tm, tn, D)
    out_ref[...] = test_ref[...][:, None, :] - train_ref[...][None, :, :]


def _make_diffs_flat_kernel(rep):
    # test_rep_ref  : (tm, 128)   -- test features pre-tiled to a full 128-lane period
    # train_flat_ref: (1, tn*D)   -- row-major flattened train tile (lane-dense)
    # out_ref       : (tm, tn*D)  -- lane-dense output block (unmasked stores)
    def kernel(test_rep_ref, train_flat_ref, out_ref):
        t = test_rep_ref[...]
        if rep > 1:
            # Repeat whole 128-lane groups: lane-aligned copies, no intra-vreg relayout.
            t = jnp.concatenate([t] * rep, axis=1)
        out_ref[...] = t - train_flat_ref[...]      # (1, tn*D) broadcasts over sublanes
    return kernel


def _sq_dists_kernel(test_ref, test_sq_ref, train_t_ref, train_sq_ref,
                     out_ref, acc_ref):
    # ||x - y||^2 = ||x||^2 + ||y||^2 - 2<x, y>.  The <x,y> contraction runs on the
    # MXU in the operands' native dtype (f32 accumulation); norms are precomputed
    # in the wrapper so no per-step VPU/XLU reduction is needed.
    k = pl.program_id(2)

    @pl.when(k == 0)
    def _():
        acc_ref[...] = jnp.zeros_like(acc_ref)

    acc_ref[...] += jax.lax.dot_general(
        test_ref[...], train_t_ref[...],
        dimension_numbers=(((1,), (0,)), ((), ())),
        preferred_element_type=jnp.float32)

    @pl.when(k == pl.num_programs(2) - 1)
    def _():
        d2 = test_sq_ref[...] + train_sq_ref[...] - 2.0 * acc_ref[...]
        out_ref[...] = jnp.maximum(d2, 0.0)   # clamp cancellation-induced negatives


# ---------------------------------------------------------------------------
# Module port
# ---------------------------------------------------------------------------

class PallasKDEKernel:
    """Pallas port of the concrete compute in the PyTorch `Kernel` base class."""

    def __init__(self, bandwidth: float = 1.0):
        # Deterministic "parameter" (matches nn.Module __init__); unused by _diffs.
        self.bandwidth = float(bandwidth)

    # -- exact port of Kernel._diffs ----------------------------------------
    def _diffs(self, test_Xs: jax.Array, train_Xs: jax.Array) -> jax.Array:
        """diffs[i, j, ...] = test_Xs[i, ...] - train_Xs[j, ...] (torch broadcast)."""
        Nq, Nt = test_Xs.shape[0], train_Xs.shape[0]
        feat_shape = test_Xs.shape[1:]
        assert feat_shape == train_Xs.shape[1:], "feature shapes must match"

        dtype = jnp.promote_types(test_Xs.dtype, train_Xs.dtype)
        test2d, D = _flatten_features(test_Xs.astype(dtype))
        train2d, _ = _flatten_features(train_Xs.astype(dtype))

        if D < 128 and 128 % D == 0:
            out3 = self._diffs_flat(test2d, train2d, Nq, Nt, D, dtype)
        else:
            out3 = self._diffs_blocked(test2d, train2d, Nq, Nt, D, dtype)
        return out3.reshape(Nq, Nt, *feat_shape)

    def _diffs_flat(self, test2d, train2d, Nq, Nt, D, dtype):
        """Lane-dense path for D < 128: write (Nq, Nt*D) flat, reshape back for free."""
        itemsize = jnp.dtype(dtype).itemsize
        sub = _sublane_multiple(dtype)
        limit, budget = _vmem_limits()

        group = 128 // D                   # train rows per 128-lane group
        rep_cap = 32                       # concat pieces per block (code-size cap)
        tn = min(_round_up(Nt, group), rep_cap * group)
        lanes = tn * D                     # multiple of 128
        rep = lanes // 128

        fixed = 2 * _tile_bytes((1, lanes), dtype)        # train tile, double-buffered
        per_row = 2 * (lanes + 128) * itemsize            # out + test_rep rows, 2-buffered
        tm = (budget - fixed) // per_row
        tm = max(sub, min(int(tm), 1024, _round_up(Nq, sub)))
        tm = max(sub, (tm // sub) * sub)

        Nq_pad = _round_up(Nq, tm)
        Nt_pad = _round_up(Nt, tn)
        if Nq_pad != Nq:
            test2d = jnp.pad(test2d, ((0, Nq_pad - Nq), (0, 0)))
        if Nt_pad != Nt:
            train2d = jnp.pad(train2d, ((0, Nt_pad - Nt), (0, 0)))

        test_rep = jnp.tile(test2d, (1, 128 // D))        # (Nq_pad, 128), tiny
        train_flat = train2d.reshape(1, Nt_pad * D)       # lane-dense train, free reshape

        out_flat = pl.pallas_call(
            _make_diffs_flat_kernel(rep),
            out_shape=jax.ShapeDtypeStruct((Nq_pad, Nt_pad * D), dtype),
            grid_spec=pl.GridSpec(
                grid=(Nq_pad // tm, Nt_pad // tn),
                in_specs=[
                    pl.BlockSpec((tm, 128), lambda i, j: (i, 0)),
                    pl.BlockSpec((1, tn * D), lambda i, j: (0, j)),
                ],
                out_specs=pl.BlockSpec((tm, tn * D), lambda i, j: (i, j)),
            ),
            compiler_params=pltpu.CompilerParams(
                dimension_semantics=("parallel", "parallel"),
                vmem_limit_bytes=limit),
        )(test_rep, train_flat)

        return out_flat.reshape(Nq_pad, Nt_pad, D)[:Nq, :Nt]

    def _diffs_blocked(self, test2d, train2d, Nq, Nt, D, dtype):
        """General path (D >= 128 or 128 % D != 0): (tm, tn, D) output blocks."""
        sub = _sublane_multiple(dtype)
        limit, budget = _vmem_limits()

        tn = min(_round_up(Nt, sub), 256)
        tm = min(_round_up(Nq, sub), 256)

        def cost(tm_, tn_):   # layout-aware, double-buffered
            return (2 * _tile_bytes((tm_, D), dtype)
                    + 2 * _tile_bytes((tn_, D), dtype)
                    + 2 * _tile_bytes((tm_, tn_, D), dtype))

        while cost(tm, tn) > budget:
            if tn > sub and tn >= tm:
                tn = max(sub, _round_up(tn // 2, sub))
            elif tm > sub:
                tm = max(sub, _round_up(tm // 2, sub))
            else:
                break

        Nq_pad = _round_up(Nq, tm)
        Nt_pad = _round_up(Nt, tn)
        if Nq_pad != Nq:
            test2d = jnp.pad(test2d, ((0, Nq_pad - Nq), (0, 0)))
        if Nt_pad != Nt:
            train2d = jnp.pad(train2d, ((0, Nt_pad - Nt), (0, 0)))

        out = pl.pallas_call(
            _diffs_blocked_kernel,
            out_shape=jax.ShapeDtypeStruct((Nq_pad, Nt_pad, D), dtype),
            grid_spec=pl.GridSpec(
                grid=(Nq_pad // tm, Nt_pad // tn),
                in_specs=[
                    pl.BlockSpec((tm, D), lambda i, j: (i, 0)),
                    pl.BlockSpec((tn, D), lambda i, j: (j, 0)),
                ],
                out_specs=pl.BlockSpec((tm, tn, D), lambda i, j: (i, j, 0)),
            ),
            compiler_params=pltpu.CompilerParams(
                dimension_semantics=("parallel", "parallel"),
                vmem_limit_bytes=limit),
        )(test2d, train2d)
        return out[:Nq, :Nt]

    # -- fused reduction (what concrete KDE kernels actually consume) --------
    def sum_sq_diffs(self, test_Xs: jax.Array, train_Xs: jax.Array) -> jax.Array:
        """Fused sum_d (test[i,d]-train[j,d])^2 -> (N_test, N_train) float32.

        Prefer this over materializing `_diffs` (especially on v5e): it writes
        D-times fewer bytes to HBM and does the contraction on the MXU in the
        inputs' native dtype.  Precision note: the ||x||^2+||y||^2-2<x,y> form
        can cancel for near-duplicate points; the result is clamped at 0.
        """
        Nq, Nt = test_Xs.shape[0], train_Xs.shape[0]
        feat_shape = test_Xs.shape[1:]
        assert feat_shape == train_Xs.shape[1:], "feature shapes must match"

        dtype = jnp.promote_types(test_Xs.dtype, train_Xs.dtype)
        test2d, D = _flatten_features(test_Xs.astype(dtype))
        train2d, _ = _flatten_features(train_Xs.astype(dtype))

        sub = _sublane_multiple(dtype)
        limit, budget = _vmem_limits()
        big = budget >= 64 * 1024 * 1024

        # K (feature) axis: a single full-D step for moderate D; 128-multiple tiles
        # (zero-padded features) for large D so input VMEM stays bounded.
        if D > 1024:
            Dp = _round_up(D, 128)
            tk = 512 if Dp % 512 == 0 else (256 if Dp % 256 == 0 else 128)
        else:
            Dp = D
            tk = D

        # Lane-dense train tiles, MXU-aligned test tiles (bigger caps on 128 MiB chips).
        tn_cap = 2048 if big else 1024
        tm_cap = 512 if big else 256
        tn = min(_round_up(Nt, 128), tn_cap)
        Nq_sub = _round_up(Nq, sub)
        if Nq_sub <= 256:
            tm = Nq_sub
        else:
            tm = min(_round_up(Nq_sub, 256), tm_cap)

        # If the whole problem fits one (i, j) tile, split the train axis so both
        # TensorCores (v7x) get work; harmless on single-core parts.
        if _round_up(Nq, tm) == tm and _round_up(Nt, tn) == tn and tn >= 256:
            tn = max(128, _round_up(tn // 2, 128))

        def cost(tm_, tn_, tk_):   # layout-aware, double-buffered
            return (2 * _tile_bytes((tm_, tk_), dtype)          # test block
                    + 2 * _tile_bytes((tk_, tn_), dtype)        # train^T block
                    + 2 * _tile_bytes((tm_, 1), jnp.float32)    # test norms
                    + 2 * _tile_bytes((1, tn_), jnp.float32)    # train norms
                    + 2 * _tile_bytes((tm_, tn_), jnp.float32)  # output block
                    + _tile_bytes((tm_, tn_), jnp.float32))     # accumulator scratch

        while cost(tm, tn, tk) > budget:
            if tn > 128 and tn >= tm:
                tn = max(128, _round_up(tn // 2, 128))
            elif tm > sub:
                tm = max(sub, _round_up(tm // 2, sub))
            elif tk > 128 and tk % 256 == 0:
                tk //= 2
            else:
                break

        Nq_pad = _round_up(Nq, tm)
        Nt_pad = _round_up(Nt, tn)

        test2d = jnp.pad(test2d, ((0, Nq_pad - Nq), (0, Dp - D)))
        train2d = jnp.pad(train2d, ((0, Nt_pad - Nt), (0, Dp - D)))

        # One-time wrapper work: transpose train to (D, Nt) so the MXU sees its
        # natural (K, N) weight layout (no per-step XLU transpose), and hoist both
        # squared-norm vectors out of the inner sweep.
        train_t = train2d.T                                              # (Dp, Nt_pad)
        test_sq = jnp.sum(jnp.square(test2d.astype(jnp.float32)),
                          axis=1, keepdims=True)                         # (Nq_pad, 1)
        train_sq = jnp.sum(jnp.square(train2d.astype(jnp.float32)),
                           axis=1)[None, :]                              # (1, Nt_pad)

        out = pl.pallas_call(
            _sq_dists_kernel,
            out_shape=jax.ShapeDtypeStruct((Nq_pad, Nt_pad), jnp.float32),
            grid_spec=pltpu.PrefetchScalarGridSpec(
                num_scalar_prefetch=0,
                grid=(Nq_pad // tm, Nt_pad // tn, Dp // tk),
                in_specs=[
                    pl.BlockSpec((tm, tk), lambda i, j, k: (i, k)),   # test
                    pl.BlockSpec((tm, 1), lambda i, j, k: (i, 0)),    # test norms
                    pl.BlockSpec((tk, tn), lambda i, j, k: (k, j)),   # train^T
                    pl.BlockSpec((1, tn), lambda i, j, k: (0, j)),    # train norms
                ],
                out_specs=pl.BlockSpec((tm, tn), lambda i, j, k: (i, j)),
                scratch_shapes=[pltpu.VMEM((tm, tn), jnp.float32)],
            ),
            compiler_params=pltpu.CompilerParams(
                dimension_semantics=("parallel", "parallel", "arbitrary"),
                vmem_limit_bytes=limit),
        )(test2d, test_sq, train_t, train_sq)

        return out[:Nq, :Nt]


if __name__ == "__main__":
    key = jax.random.PRNGKey(0)
    k1, k2, k3, k4 = jax.random.split(key, 4)

    kernel = PallasKDEKernel(bandwidth=1.0)

    # Small shapes consistent with the module's (N, D) usage; N_test deliberately
    # not a multiple of any tile size to exercise the pad-and-slice path.
    N_test, N_train, D = 52, 200, 32
    test_Xs = jax.random.normal(k1, (N_test, D), dtype=jnp.float32)
    train_Xs = jax.random.normal(k2, (N_train, D), dtype=jnp.float32)

    # Exact port of Kernel._diffs (lane-dense flat path since D < 128).
    diffs = jax.block_until_ready(kernel._diffs(test_Xs, train_Xs))
    ref = test_Xs[:, None, :] - train_Xs[None, :, :]
    assert diffs.shape == (N_test, N_train, D)
    assert jnp.allclose(diffs, ref, atol=1e-6), "diffs mismatch vs reference"

    # Fused squared-distance path (native-dtype MXU matmul + precomputed norms).
    sq = jax.block_until_ready(kernel.sum_sq_diffs(test_Xs, train_Xs))
    sq_ref = jnp.sum(ref * ref, axis=-1)
    assert sq.shape == (N_test, N_train)
    assert jnp.allclose(sq, sq_ref, rtol=1e-2, atol=0.5), "sq-dist mismatch vs reference"

    # Large-D case exercises the K (feature) grid axis with the f32 accumulator.
    Nq2, Nt2, D2 = 24, 136, 1280
    test2 = jax.random.normal(k3, (Nq2, D2), dtype=jnp.float32)
    train2 = jax.random.normal(k4, (Nt2, D2), dtype=jnp.float32)
    sq2 = jax.block_until_ready(kernel.sum_sq_diffs(test2, train2))
    sq2_ref = jnp.sum((test2[:, None, :] - train2[None, :, :]) ** 2, axis=-1)
    assert sq2.shape == (Nq2, Nt2)
    assert jnp.allclose(sq2, sq2_ref, rtol=1e-2, atol=0.5), "K-tiled sq-dist mismatch"

    print("KERNEL_OK")
</pallas_src>

<mosaic_0001>
module attributes {stable_mosaic.version = 11 : i64} {
  func.func @kernel(%arg0: i32, %arg1: i32, %arg2: memref<56x128xf32, #tpu.memory_space<vmem>>, %arg3: memref<1x4096xf32, #tpu.memory_space<vmem>>, %arg4: memref<56x4096xf32, #tpu.memory_space<vmem>>) attributes {dimension_semantics = [#tpu.dimension_semantics<parallel>, #tpu.dimension_semantics<parallel>], iteration_bounds = array<i64: 1, 2>, scalar_prefetch = 0 : i64, scratch_operands = 0 : i64, tpu.core_type = #tpu.core_type<tc>, window_params = [{transform_indices = @transform_0, window_bounds = array<i64: 56, 128>}, {transform_indices = @transform_1, window_bounds = array<i64: 1, 4096>}, {transform_indices = @transform_2, window_bounds = array<i64: 56, 4096>}]} {
    %c0 = arith.constant 0 : index
    %c0_0 = arith.constant 0 : index
    %0 = vector.load %arg2[%c0, %c0_0] : memref<56x128xf32, #tpu.memory_space<vmem>>, vector<56x128xf32>
    %1 = tpu.concatenate %0, %0, %0, %0, %0, %0, %0, %0, %0, %0, %0, %0, %0, %0, %0, %0 in 1 : vector<56x128xf32>, vector<56x128xf32>, vector<56x128xf32>, vector<56x128xf32>, vector<56x128xf32>, vector<56x128xf32>, vector<56x128xf32>, vector<56x128xf32>, vector<56x128xf32>, vector<56x128xf32>, vector<56x128xf32>, vector<56x128xf32>, vector<56x128xf32>, vector<56x128xf32>, vector<56x128xf32>, vector<56x128xf32> -> vector<56x2048xf32>
    %2 = tpu.concatenate %0, %0, %0, %0, %0, %0, %0, %0, %0, %0, %0, %0, %0, %0, %0, %0 in 1 : vector<56x128xf32>, vector<56x128xf32>, vector<56x128xf32>, vector<56x128xf32>, vector<56x128xf32>, vector<56x128xf32>, vector<56x128xf32>, vector<56x128xf32>, vector<56x128xf32>, vector<56x128xf32>, vector<56x128xf32>, vector<56x128xf32>, vector<56x128xf32>, vector<56x128xf32>, vector<56x128xf32>, vector<56x128xf32> -> vector<56x2048xf32>
    %3 = tpu.concatenate %1, %2 in 1 : vector<56x2048xf32>, vector<56x2048xf32> -> vector<56x4096xf32>
    %c0_1 = arith.constant 0 : index
    %c0_2 = arith.constant 0 : index
    %4 = vector.load %arg3[%c0_1, %c0_2] : memref<1x4096xf32, #tpu.memory_space<vmem>>, vector<1x4096xf32>
    %5 = vector.broadcast %4 : vector<1x4096xf32> to vector<56x4096xf32>
    %6 = arith.subf %3, %5 : vector<56x4096xf32>
    %c0_3 = arith.constant 0 : index
    %c0_4 = arith.constant 0 : index
    %7 = vector.load %arg4[%c0_3, %c0_4] : memref<56x4096xf32, #tpu.memory_space<vmem>>, vector<56x4096xf32>
    tpu.vector_store %arg4[%c0_3, %c0_4], %6 {strides = array<i32>} : memref<56x4096xf32, #tpu.memory_space<vmem>>, vector<56x4096xf32>,
    return
  }
  func.func @transform_0(%arg0: i32, %arg1: i32) -> (i32, i32) {
    %c0_i32 = arith.constant 0 : i32
    %c0_i32_0 = arith.constant 0 : i32
    return %arg0, %c0_i32 : i32, i32
  }
  func.func @transform_1(%arg0: i32, %arg1: i32) -> (i32, i32) {
    %c0_i32 = arith.constant 0 : i32
    %c0_i32_0 = arith.constant 0 : i32
    return %c0_i32, %arg1 : i32, i32
  }
  func.func @transform_2(%arg0: i32, %arg1: i32) -> (i32, i32) {
    %c0_i32 = arith.constant 0 : i32
    return %arg0, %arg1 : i32, i32
  }
}

</mosaic_0001>

<bundles_post_ra>
// kernel: tpu_custom_call.1
= control target key start
LH: loop header
LB: loop body
LE: loop exit
PB: predicated region body
PF: predicated region fallthrough
CT: control target
= control target key end

     0   :  { %7 = vsyncpa [#allocation3], 0  ;;  %s2187_s0 = inlined_call_operand.hbm [shape: f32[56,128], index: 0, kind: input, shape index: {}]   ;;  %s2188_s1 = inlined_call_operand.hbm [shape: f32[1,8192], index: 1, kind: input, shape index: {}]   ;;  %s2189_s2 = inlined_call_operand.hbm [shape: f32[56,8192], index: 2, kind: output, shape index: {}]  }
   0x1   :  { %8 = vsyncpa [#allocation6], 0 }
   0x2   :  { %10 = vsyncpa [#allocation6 + $0x1], 0 }
   0x3   :  { %11 = vsyncpa [#allocation4], 0 }
   0x4   :  { %13 = vsyncpa [#allocation4 + $0x1], 0  ;;  %s1198_s9 = smov 0   ;;  %s1200_s10 = smov 0  }
   0x5   :  { %s1202_s11 = smov 0   ;;  %s1204_s12 = smov 0  }
   0x6   :  { %s1206_s13 = smov 0   ;;  %s1208_s14 = smov 0  }
   0x7 LB: > { %s939_s15 = sadd.s32 4294967295, %s1173_s14   ;;  %s940_s16 = sadd.s32 4294967294, %s1173_s14   ;;  %s1173_s14 = sphi %s1208_s14, %s19_s14   ;;  %s1169_s13 = sphi %s1206_s13, %s2207_s13   ;;  %s1165_s12 = sphi %s1204_s12, %s2206_s12   ;;  %s1161_s11 = sphi %s1202_s11, %s2205_s11   ;;  %s1157_s10 = sphi %s1200_s10, %s2204_s10   ;;  %s1153_s9 = sphi %s1198_s9, %s2203_s9  }
   0x8   : > { %p77_p0 = scmp.ne.s32.totalorder %s1157_s10, %s1153_s9  ;;  %p1232_p1 = scmp.eq.s32.totalorder %s939_s15, 0 }
   0x9   : > { %p1236_p2 = scmp.eq.s32.totalorder %s939_s15, 1  ;;  %p109_p3 = scmp.eq.s32.totalorder %s940_s16, 1 }
   0xa   : > { %p1242_p4 = por %p1232_p1, %p77_p0  ;;  %p941_p5 = scmp.ge.s32.totalorder %s1173_s14, 1 }
   0xb   : > { %p1247_p6 = por %p109_p3, %p77_p0  ;;  %p116_p7 = scmp.lt.s32.totalorder %s1173_s14, 3 }
   0xc   : > { %s2193_s19 = scalar_select %p1242_p4, 1, 0 }
   0xd   : > { %s2194_s20 = scalar_select %p1247_p6, 1, 0 }
   0xe   : > { %p1252_p8 = pnand %p941_p5, %p116_p7  ;;  %s1175_s22 = smov [#allocation2]  }
   0xf   : > { %s131_s23 = sshll.u32 %s1175_s22, 4  ;;  %s28_s25 = sadd.s32 1, %s1169_s13  ;;  %s132_s23 = int_to_ptr.vmem [resolvable:$true] %s131_s23 }
  0x10   : > { %p965_p9 = pneg %p1252_p8  ;;  %s1046_s26 = scalar_lea.vmem %s132_s23, 896 }
  0x11   : > { %p1047_p13 = scmp.ne.s32.totalorder %s132_s23, %s1046_s26  ;;  %p1054_p5 = scmp.lt.s32.totalorder %s132_s23, %s132_s23 }
  0x12   : > { %p1261_p11 = pnand %p965_p9, %p1232_p1  ;;  %p1055_p7 = scmp.lt.s32.totalorder %s1046_s26, %s1046_s26 }
  0x14   : > { %p1037_p12 = pneg %p1261_p11  ;;  %p1056_p6 = por %p1055_p7, %p1054_p5 }
  0x16   : > { %p1049_p0 = pnand %p1047_p13, %p1037_p12 }
  0x18   : > { %p1050_p3 = pneg %p1049_p0 }
  0x1a   : > { %p1057_p4 = pnand %p1056_p6, %p1050_p3 }
  0x1c   : > { %1060 = shalt.err (!%p1057_p4)
}
  0x1d   : > { %s1176_s27 = smov 128   ;;  %s1177_s28 = smov 8  }
  0x1e   : > { %968 = dma.hbm_to_vmem [thread:$0]  (!%p1261_p11), %s2187_s0, 896, %s132_s23, [#allocation3], %s1176_s27, %s1176_s27, %s1177_s28  }
  0x1f   : > { %p29_p6 = scmp.ge.s32.totalorder %s28_s25, 2  ;;  %s64_s3 = sadd.s32 1, %s1161_s11 }
  0x20   : > { %p71_p4 = scmp.ne.s32.totalorder %s1161_s11, %s1157_s10  ;;  %p72_p9 = scmp.eq.s32.totalorder %s1173_s14, 0 }
  0x21   : > { %s2209_s25 = smov (%p29_p6, %s28_s25), 0  ;;  %p978_p0 = scmp.lt.s32.totalorder %s1173_s14, 2 }
  0x22   : > { %p1279_p12 = por %p72_p9, %p71_p4  ;;  %p1285_p13 = por %p1236_p2, %p71_p4 }
  0x23   : > { %s61_s6 = ssub.s32 %s1169_s13, %s2209_s25  ;;  %s145_s7 = sand.u32 1, %s1161_s11  }
  0x24   : > { %p62_p11 = scmp.eq.s32.totalorder %s61_s6, 0  ;;  %s944_s8 = sshll.u32 %s145_s7, 5 }
  0x25   : > { %s954_s16 = sshll.u32 %s1169_s13, 9  ;;  %s149_s26 = scalar_lea.vmem [#allocation5], %s944_s8 }
  0x26   : > { %s1294_s15 = scalar_select %p62_p11, %s1161_s11, %s64_s3  }
  0x27   : > { %s155_s24 = scalar_lea.hbm %s2188_s1, %s954_s16  ;;  %s157_s27 = sshll.u32 %s149_s26, 4  ;;  %s158_s27 = int_to_ptr.vmem [resolvable:$true] %s157_s27 }
  0x28   : > { %p1302_p2 = pnand %p978_p0, %p1279_p12  ;;  %s146_s28 = scalar_lea.sflag [#allocation6], %s145_s7 }
  0x29   : > { %s1074_s29 = scalar_lea.vmem %s158_s27, 512  ;;  %s1178_s30 = smov [#allocation5]  }
  0x2a   : > { %p1063_p3 = pneg %p1302_p2  ;;  %p1075_p5 = scmp.ne.s32.totalorder %s158_s27, %s1074_s29 }
  0x2b   : > { %s1079_s3 = sshll.u32 %s1178_s30, 4  ;;  %s1080_s3 = int_to_ptr.vmem [resolvable:$false] %s1079_s3 }
  0x2c   : > { %p1077_p7 = pnand %p1075_p5, %p1063_p3  ;;  %s1081_s6 = scalar_lea.vmem %s1080_s3, 1024 }
  0x2d   : > { %p1082_p4 = scmp.lt.s32.totalorder %s158_s27, %s1080_s3  ;;  %p1083_p9 = scmp.lt.s32.totalorder %s1081_s6, %s1074_s29 }
  0x2e   : > { %p1078_p6 = pneg %p1077_p7 }
  0x2f   : > { %p1084_p11 = por %p1083_p9, %p1082_p4 }
  0x31   : > { %p1085_p10 = pnand %p1084_p11, %p1078_p6 }
  0x33   : > { %1088 = shalt.err (!%p1085_p10)
}
  0x34   : > { %972 = dma.hbm_to_vmem [thread:$0]  (!%p1302_p2), %s155_s24, 512, %s158_s27, %s146_s28  }
  0x35   : > { %166 = sbr.rel (%p1252_p8) target bundleno = 201 (0xc9), region = 28 }
  0x3a   : > { %1140 = dma.done.wait (%p1232_p1), [#allocation3], 896  }
  0x3b   : > { %1142 = vsyncadd (%p1232_p1), [#allocation3], 4294966400  ;;  %s1317_s4 = sand.u32 1, %s1157_s10   ;;  %p2200_p10 = scmp.ne.s32.totalorder %s2193_s19, 0 }
  0x3c   : > { %s949_s7 = sshll.u32 %s1317_s4, 5  ;;  %s173_s8 = scalar_lea.sflag [#allocation6], %s1317_s4 }
  0x3d   : > { %s1321_s16 = scalar_lea.vmem [#allocation5], %s949_s7 }
  0x3e   : > { %1144 = dma.done.wait (%p2200_p10), %s173_s8, 512  }
  0x3f   : > { %1146 = vsyncadd (%p2200_p10), %s173_s8, 4294966784  ;;  %v216_v0 = vlaneseq  ;;  %s956_s17 = smul.u32 1792, %s1317_s4  ;;  %v1344_v10 = vld [vmem:[#allocation2] sm:$0xff]  ;;  %v208_v11 = vld [vmem:[%s1321_s16] sm:$0xff]  ;;  %s955_s21 = sshll.u32 %s1165_s12, 12 }
  0x40   : > { %v209_v20 = vld [vmem:[%s1321_s16 + $0x8] sm:$0xff]  ;;  %v210_v37 = vld [vmem:[%s1321_s16 + $0x10] sm:$0xff]  ;;  %v211_v54 = vld [vmem:[%s1321_s16 + $0x18] sm:$0xff]  ;;  %s2117_s24 = scalar_lea.hbm %s2189_s2, %s955_s21  ;;  %s825_s26 = scalar_lea.sflag [#allocation4], %s1317_s4 }
  0x41   : > { %v217_v1 = vshrl.u32 %v216_v0, 7  ;;  %s1388_s19 = scalar_lea.vmem [#allocation7], %s956_s17  ;;  %s1179_s18 = smov [#allocation7]  }
  0x42   : > { %s841_s12 = sshll.u32 %s1388_s19, 4  ;;  %s1093_s28 = sshll.u32 %s1179_s18, 4  ;;  %s2131_s12 = int_to_ptr.vmem [resolvable:$true] %s841_s12  ;;  %s1094_s28 = int_to_ptr.vmem [resolvable:$false] %s1093_s28 }
  0x43   : > { %v1327_v2 = vsub.s32 0, %v217_v1  ;;  %v1329_v3 = vsub.s32 1, %v217_v1  ;;  %v1331_v4 = vsub.s32 2, %v217_v1  ;;  %v1333_v5 = vsub.s32 3, %v217_v1  ;;  %s1089_s27 = scalar_lea.vmem %s2131_s12, 28672  ;;  %s1095_s29 = scalar_lea.vmem %s1094_s28, 57344 }
  0x44   : > { %v1336_v6 = vsub.s32 4, %v217_v1  ;;  %v1338_v7 = vsub.s32 5, %v217_v1  ;;  %v1340_v8 = vsub.s32 6, %v217_v1  ;;  %v1342_v9 = vsub.s32 7, %v217_v1  ;;  %p1090_p1 = scmp.ne.s32.totalorder %s2131_s12, %s1089_s27  ;;  %p1096_p0 = scmp.lt.s32.totalorder %s2131_s12, %s1094_s28 }
  0x45   : > { %v1348_v12 = vrot.slane %v208_v11, %v1327_v2  ;;  %v1351_v13 = vrot.slane %v208_v11, %v1329_v3  ;;  %v1354_v14 = vrot.slane %v208_v11, %v1331_v4  ;;  %v1357_v15 = vrot.slane %v208_v11, %v1333_v5  ;;  %p1097_p2 = scmp.lt.s32.totalorder %s1095_s29, %s1089_s27 }
  0x46   : > { %v1360_v16 = vrot.slane %v208_v11, %v1336_v6  ;;  %v1363_v17 = vrot.slane %v208_v11, %v1338_v7  ;;  %v1366_v18 = vrot.slane %v208_v11, %v1340_v8  ;;  %v1369_v19 = vrot.slane %v208_v11, %v1342_v9  ;;  %p1091_p8 = pnand %p1090_p1, %p1285_p13 }
  0x47   : > { %v376_v21 = vsub.f32 %v1344_v10, %v1348_v12  ;;  %v377_v22 = vsub.f32 %v1344_v10, %v1351_v13  ;;  %v378_v23 = vsub.f32 %v1344_v10, %v1354_v14  ;;  %v379_v24 = vsub.f32 %v1344_v10, %v1357_v15  ;;  %p1098_p3 = por %p1097_p2, %p1096_p0 }
  0x48   : > { %v380_v25 = vsub.f32 %v1344_v10, %v1360_v16  ;;  %v381_v26 = vsub.f32 %v1344_v10, %v1363_v17  ;;  %v382_v27 = vsub.f32 %v1344_v10, %v1366_v18  ;;  %v383_v28 = vsub.f32 %v1344_v10, %v1369_v19  ;;  %p1092_p12 = pneg %p1091_p8 }
  0x49   : > { %600 = vst [vmem:[%s1388_s19] sm:$0xff] %v376_v21  ;;  %601 = vst [vmem:[%s1388_s19 + $0x8] sm:$0xff] %v377_v22  ;;  %v1395_v29 = vrot.slane %v209_v20, %v1327_v2  ;;  %v1398_v30 = vrot.slane %v209_v20, %v1329_v3  ;;  %v1401_v31 = vrot.slane %v209_v20, %v1331_v4 }
  0x4a   : > { %602 = vst [vmem:[%s1388_s19 + $0x10] sm:$0xff] %v378_v23  ;;  %603 = vst [vmem:[%s1388_s19 + $0x18] sm:$0xff] %v379_v24  ;;  %v1404_v32 = vrot.slane %v209_v20, %v1333_v5  ;;  %v1411_v33 = vrot.slane %v209_v20, %v1336_v6  ;;  %v1414_v34 = vrot.slane %v209_v20, %v1338_v7  ;;  %p1099_p5 = pnand %p1098_p3, %p1092_p12 }
  0x4b   : > { %604 = vst [vmem:[%s1388_s19 + $0x20] sm:$0xff] %v380_v25  ;;  %605 = vst [vmem:[%s1388_s19 + $0x28] sm:$0xff] %v381_v26  ;;  %v1417_v35 = vrot.slane %v209_v20, %v1340_v8  ;;  %v1420_v36 = vrot.slane %v209_v20, %v1342_v9  ;;  %v384_v38 = vsub.f32 %v1344_v10, %v1395_v29 }
  0x4c   : > { %606 = vst [vmem:[%s1388_s19 + $0x30] sm:$0xff] %v382_v27  ;;  %607 = vst [vmem:[%s1388_s19 + $0x38] sm:$0xff] %v383_v28  ;;  %v385_v39 = vsub.f32 %v1344_v10, %v1398_v30  ;;  %v386_v40 = vsub.f32 %v1344_v10, %v1401_v31  ;;  %v387_v41 = vsub.f32 %v1344_v10, %v1404_v32 }
  0x4d   : > { %v388_v42 = vsub.f32 %v1344_v10, %v1411_v33  ;;  %v389_v43 = vsub.f32 %v1344_v10, %v1414_v34  ;;  %v390_v44 = vsub.f32 %v1344_v10, %v1417_v35  ;;  %v391_v45 = vsub.f32 %v1344_v10, %v1420_v36  ;;  %608 = vst [vmem:[%s1388_s19 + $0x40] sm:$0xff] %v384_v38 }
  0x4e   : > { %609 = vst [vmem:[%s1388_s19 + $0x48] sm:$0xff] %v385_v39  ;;  %610 = vst [vmem:[%s1388_s19 + $0x50] sm:$0xff] %v386_v40  ;;  %v1444_v46 = vrot.slane %v210_v37, %v1327_v2  ;;  %v1447_v47 = vrot.slane %v210_v37, %v1329_v3  ;;  %v1450_v48 = vrot.slane %v210_v37, %v1331_v4 }
  0x4f   : > { %611 = vst [vmem:[%s1388_s19 + $0x58] sm:$0xff] %v387_v41  ;;  %v1453_v49 = vrot.slane %v210_v37, %v1333_v5  ;;  %612 = vst [vmem:[%s1388_s19 + $0x60] sm:$0xff] %v388_v42  ;;  %v1460_v50 = vrot.slane %v210_v37, %v1336_v6  ;;  %v1463_v51 = vrot.slane %v210_v37, %v1338_v7 }
  0x50   : > { %613 = vst [vmem:[%s1388_s19 + $0x68] sm:$0xff] %v389_v43  ;;  %614 = vst [vmem:[%s1388_s19 + $0x70] sm:$0xff] %v390_v44  ;;  %v1466_v52 = vrot.slane %v210_v37, %v1340_v8  ;;  %v1469_v53 = vrot.slane %v210_v37, %v1342_v9  ;;  %v392_v55 = vsub.f32 %v1344_v10, %v1444_v46 }
  0x51   : > { %615 = vst [vmem:[%s1388_s19 + $0x78] sm:$0xff] %v391_v45  ;;  %v393_v56 = vsub.f32 %v1344_v10, %v1447_v47  ;;  %v394_v57 = vsub.f32 %v1344_v10, %v1450_v48  ;;  %v395_v58 = vsub.f32 %v1344_v10, %v1453_v49  ;;  %v396_v59 = vsub.f32 %v1344_v10, %v1460_v50 }
  0x52   : > { %v397_v60 = vsub.f32 %v1344_v10, %v1463_v51  ;;  %v398_v61 = vsub.f32 %v1344_v10, %v1466_v52  ;;  %v399_v62 = vsub.f32 %v1344_v10, %v1469_v53  ;;  %616 = vst [vmem:[%s1388_s19 + $0x80] sm:$0xff] %v392_v55  ;;  %v1493_v63 = vrot.slane %v211_v54, %v1327_v2 }
  0x53   : > { %617 = vst [vmem:[%s1388_s19 + $0x88] sm:$0xff] %v393_v56  ;;  %618 = vst [vmem:[%s1388_s19 + $0x90] sm:$0xff] %v394_v57  ;;  %v1496_v0 = vrot.slane %v211_v54, %v1329_v3  ;;  %v1499_v1 = vrot.slane %v211_v54, %v1331_v4  ;;  %v1502_v11 = vrot.slane %v211_v54, %v1333_v5  ;;  %v1520_v5 = vld [vmem:[#allocation2 + $0x8] sm:$0xff] }
  0x54   : > { %619 = vst [vmem:[%s1388_s19 + $0x98] sm:$0xff] %v395_v58  ;;  %620 = vst [vmem:[%s1388_s19 + $0xa0] sm:$0xff] %v396_v59  ;;  %v1509_v20 = vrot.slane %v211_v54, %v1336_v6  ;;  %v1512_v2 = vrot.slane %v211_v54, %v1338_v7  ;;  %v1515_v3 = vrot.slane %v211_v54, %v1340_v8 }
  0x55   : > { %621 = vst [vmem:[%s1388_s19 + $0xa8] sm:$0xff] %v397_v60  ;;  %622 = vst [vmem:[%s1388_s19 + $0xb0] sm:$0xff] %v398_v61  ;;  %v1518_v4 = vrot.slane %v211_v54, %v1342_v9  ;;  %v400_v21 = vsub.f32 %v1344_v10, %v1493_v63  ;;  %v401_v6 = vsub.f32 %v1344_v10, %v1496_v0 }
  0x56   : > { %623 = vst [vmem:[%s1388_s19 + $0xb8] sm:$0xff] %v399_v62  ;;  %v402_v7 = vsub.f32 %v1344_v10, %v1499_v1  ;;  %v403_v8 = vsub.f32 %v1344_v10, %v1502_v11  ;;  %v404_v9 = vsub.f32 %v1344_v10, %v1509_v20  ;;  %v405_v22 = vsub.f32 %v1344_v10, %v1512_v2 }
  0x57   : > { %v406_v23 = vsub.f32 %v1344_v10, %v1515_v3  ;;  %v407_v24 = vsub.f32 %v1344_v10, %v1518_v4  ;;  %624 = vst [vmem:[%s1388_s19 + $0xc0] sm:$0xff] %v400_v21  ;;  %625 = vst [vmem:[%s1388_s19 + $0xc8] sm:$0xff] %v401_v6  ;;  %v408_v25 = vsub.f32 %v1520_v5, %v1348_v12  ;;  %v1610_v6 = vld [vmem:[#allocation2 + $0x10] sm:$0xff] }
  0x58   : > { %626 = vst [vmem:[%s1388_s19 + $0xd0] sm:$0xff] %v402_v7  ;;  %627 = vst [vmem:[%s1388_s19 + $0xd8] sm:$0xff] %v403_v8  ;;  %v409_v26 = vsub.f32 %v1520_v5, %v1351_v13  ;;  %v410_v27 = vsub.f32 %v1520_v5, %v1354_v14  ;;  %v411_v10 = vsub.f32 %v1520_v5, %v1357_v15 }
  0x59   : > { %628 = vst [vmem:[%s1388_s19 + $0xe0] sm:$0xff] %v404_v9  ;;  %629 = vst [vmem:[%s1388_s19 + $0xe8] sm:$0xff] %v405_v22  ;;  %v412_v28 = vsub.f32 %v1520_v5, %v1360_v16  ;;  %v413_v37 = vsub.f32 %v1520_v5, %v1363_v17  ;;  %v414_v38 = vsub.f32 %v1520_v5, %v1366_v18 }
  0x5a   : > { %630 = vst [vmem:[%s1388_s19 + $0xf0] sm:$0xff] %v406_v23  ;;  %631 = vst [vmem:[%s1388_s19 + $0xf8] sm:$0xff] %v407_v24  ;;  %v415_v39 = vsub.f32 %v1520_v5, %v1369_v19  ;;  %v416_v40 = vsub.f32 %v1520_v5, %v1395_v29  ;;  %v417_v41 = vsub.f32 %v1520_v5, %v1398_v30 }
  0x5b   : > { %632 = vst [vmem:[%s1388_s19 + $0x100] sm:$0xff] %v408_v25  ;;  %633 = vst [vmem:[%s1388_s19 + $0x108] sm:$0xff] %v409_v26  ;;  %v418_v42 = vsub.f32 %v1520_v5, %v1401_v31  ;;  %v419_v43 = vsub.f32 %v1520_v5, %v1404_v32  ;;  %v420_v44 = vsub.f32 %v1520_v5, %v1411_v33 }
  0x5c   : > { %634 = vst [vmem:[%s1388_s19 + $0x110] sm:$0xff] %v410_v27  ;;  %635 = vst [vmem:[%s1388_s19 + $0x118] sm:$0xff] %v411_v10  ;;  %v421_v45 = vsub.f32 %v1520_v5, %v1414_v34  ;;  %v422_v54 = vsub.f32 %v1520_v5, %v1417_v35  ;;  %v423_v55 = vsub.f32 %v1520_v5, %v1420_v36 }
  0x5d   : > { %636 = vst [vmem:[%s1388_s19 + $0x120] sm:$0xff] %v412_v28  ;;  %637 = vst [vmem:[%s1388_s19 + $0x128] sm:$0xff] %v413_v37  ;;  %v424_v56 = vsub.f32 %v1520_v5, %v1444_v46  ;;  %v425_v57 = vsub.f32 %v1520_v5, %v1447_v47  ;;  %v426_v58 = vsub.f32 %v1520_v5, %v1450_v48 }
  0x5e   : > { %638 = vst [vmem:[%s1388_s19 + $0x130] sm:$0xff] %v414_v38  ;;  %639 = vst [vmem:[%s1388_s19 + $0x138] sm:$0xff] %v415_v39  ;;  %v427_v59 = vsub.f32 %v1520_v5, %v1453_v49  ;;  %v428_v60 = vsub.f32 %v1520_v5, %v1460_v50  ;;  %v429_v61 = vsub.f32 %v1520_v5, %v1463_v51 }
  0x5f   : > { %640 = vst [vmem:[%s1388_s19 + $0x140] sm:$0xff] %v416_v40  ;;  %641 = vst [vmem:[%s1388_s19 + $0x148] sm:$0xff] %v417_v41  ;;  %v430_v62 = vsub.f32 %v1520_v5, %v1466_v52  ;;  %v431_v21 = vsub.f32 %v1520_v5, %v1469_v53  ;;  %v432_v7 = vsub.f32 %v1520_v5, %v1493_v63 }
  0x60   : > { %642 = vst [vmem:[%s1388_s19 + $0x150] sm:$0xff] %v418_v42  ;;  %643 = vst [vmem:[%s1388_s19 + $0x158] sm:$0xff] %v419_v43  ;;  %v433_v8 = vsub.f32 %v1520_v5, %v1496_v0  ;;  %v434_v9 = vsub.f32 %v1520_v5, %v1499_v1  ;;  %v435_v22 = vsub.f32 %v1520_v5, %v1502_v11 }
  0x61   : > { %644 = vst [vmem:[%s1388_s19 + $0x160] sm:$0xff] %v420_v44  ;;  %645 = vst [vmem:[%s1388_s19 + $0x168] sm:$0xff] %v421_v45  ;;  %v436_v23 = vsub.f32 %v1520_v5, %v1509_v20  ;;  %v437_v24 = vsub.f32 %v1520_v5, %v1512_v2  ;;  %v438_v25 = vsub.f32 %v1520_v5, %v1515_v3 }
  0x62   : > { %646 = vst [vmem:[%s1388_s19 + $0x170] sm:$0xff] %v422_v54  ;;  %647 = vst [vmem:[%s1388_s19 + $0x178] sm:$0xff] %v423_v55  ;;  %v439_v26 = vsub.f32 %v1520_v5, %v1518_v4  ;;  %v440_v27 = vsub.f32 %v1610_v6, %v1348_v12  ;;  %v441_v10 = vsub.f32 %v1610_v6, %v1351_v13 }
  0x63   : > { %648 = vst [vmem:[%s1388_s19 + $0x180] sm:$0xff] %v424_v56  ;;  %649 = vst [vmem:[%s1388_s19 + $0x188] sm:$0xff] %v425_v57  ;;  %v442_v28 = vsub.f32 %v1610_v6, %v1354_v14  ;;  %v443_v5 = vsub.f32 %v1610_v6, %v1357_v15  ;;  %v444_v37 = vsub.f32 %v1610_v6, %v1360_v16 }
  0x64   : > { %650 = vst [vmem:[%s1388_s19 + $0x190] sm:$0xff] %v426_v58  ;;  %651 = vst [vmem:[%s1388_s19 + $0x198] sm:$0xff] %v427_v59  ;;  %v445_v38 = vsub.f32 %v1610_v6, %v1363_v17  ;;  %v446_v39 = vsub.f32 %v1610_v6, %v1366_v18  ;;  %v447_v40 = vsub.f32 %v1610_v6, %v1369_v19 }
  0x65   : > { %652 = vst [vmem:[%s1388_s19 + $0x1a0] sm:$0xff] %v428_v60  ;;  %653 = vst [vmem:[%s1388_s19 + $0x1a8] sm:$0xff] %v429_v61  ;;  %v448_v41 = vsub.f32 %v1610_v6, %v1395_v29  ;;  %v449_v42 = vsub.f32 %v1610_v6, %v1398_v30  ;;  %v450_v43 = vsub.f32 %v1610_v6, %v1401_v31 }
  0x66   : > { %654 = vst [vmem:[%s1388_s19 + $0x1b0] sm:$0xff] %v430_v62  ;;  %655 = vst [vmem:[%s1388_s19 + $0x1b8] sm:$0xff] %v431_v21  ;;  %v451_v44 = vsub.f32 %v1610_v6, %v1404_v32  ;;  %v452_v45 = vsub.f32 %v1610_v6, %v1411_v33  ;;  %v453_v54 = vsub.f32 %v1610_v6, %v1414_v34 }
  0x67   : > { %656 = vst [vmem:[%s1388_s19 + $0x1c0] sm:$0xff] %v432_v7  ;;  %657 = vst [vmem:[%s1388_s19 + $0x1c8] sm:$0xff] %v433_v8  ;;  %v454_v55 = vsub.f32 %v1610_v6, %v1417_v35  ;;  %v455_v56 = vsub.f32 %v1610_v6, %v1420_v36  ;;  %v456_v57 = vsub.f32 %v1610_v6, %v1444_v46  ;;  %v1708_v8 = vld [vmem:[#allocation2 + $0x18] sm:$0xff] }
  0x68   : > { %658 = vst [vmem:[%s1388_s19 + $0x1d0] sm:$0xff] %v434_v9  ;;  %659 = vst [vmem:[%s1388_s19 + $0x1d8] sm:$0xff] %v435_v22  ;;  %v457_v58 = vsub.f32 %v1610_v6, %v1447_v47  ;;  %v458_v59 = vsub.f32 %v1610_v6, %v1450_v48  ;;  %v459_v60 = vsub.f32 %v1610_v6, %v1453_v49 }
  0x69   : > { %660 = vst [vmem:[%s1388_s19 + $0x1e0] sm:$0xff] %v436_v23  ;;  %661 = vst [vmem:[%s1388_s19 + $0x1e8] sm:$0xff] %v437_v24  ;;  %v460_v61 = vsub.f32 %v1610_v6, %v1460_v50  ;;  %v461_v62 = vsub.f32 %v1610_v6, %v1463_v51  ;;  %v462_v21 = vsub.f32 %v1610_v6, %v1466_v52 }
  0x6a   : > { %662 = vst [vmem:[%s1388_s19 + $0x1f0] sm:$0xff] %v438_v25  ;;  %663 = vst [vmem:[%s1388_s19 + $0x1f8] sm:$0xff] %v439_v26  ;;  %v463_v7 = vsub.f32 %v1610_v6, %v1469_v53  ;;  %v464_v9 = vsub.f32 %v1610_v6, %v1493_v63  ;;  %v465_v22 = vsub.f32 %v1610_v6, %v1496_v0 }
  0x6b   : > { %664 = vst [vmem:[%s1388_s19 + $0x200] sm:$0xff] %v440_v27  ;;  %665 = vst [vmem:[%s1388_s19 + $0x208] sm:$0xff] %v441_v10  ;;  %v466_v23 = vsub.f32 %v1610_v6, %v1499_v1  ;;  %v467_v24 = vsub.f32 %v1610_v6, %v1502_v11  ;;  %v468_v25 = vsub.f32 %v1610_v6, %v1509_v20 }
  0x6c   : > { %666 = vst [vmem:[%s1388_s19 + $0x210] sm:$0xff] %v442_v28  ;;  %667 = vst [vmem:[%s1388_s19 + $0x218] sm:$0xff] %v443_v5  ;;  %v469_v26 = vsub.f32 %v1610_v6, %v1512_v2  ;;  %v470_v27 = vsub.f32 %v1610_v6, %v1515_v3  ;;  %v471_v10 = vsub.f32 %v1610_v6, %v1518_v4 }
  0x6d   : > { %668 = vst [vmem:[%s1388_s19 + $0x220] sm:$0xff] %v444_v37  ;;  %669 = vst [vmem:[%s1388_s19 + $0x228] sm:$0xff] %v445_v38  ;;  %v472_v28 = vsub.f32 %v1708_v8, %v1348_v12  ;;  %v473_v5 = vsub.f32 %v1708_v8, %v1351_v13  ;;  %v474_v37 = vsub.f32 %v1708_v8, %v1354_v14 }
  0x6e   : > { %670 = vst [vmem:[%s1388_s19 + $0x230] sm:$0xff] %v446_v39  ;;  %671 = vst [vmem:[%s1388_s19 + $0x238] sm:$0xff] %v447_v40  ;;  %v475_v6 = vsub.f32 %v1708_v8, %v1357_v15  ;;  %v476_v38 = vsub.f32 %v1708_v8, %v1360_v16  ;;  %v477_v39 = vsub.f32 %v1708_v8, %v1363_v17 }
  0x6f   : > { %672 = vst [vmem:[%s1388_s19 + $0x240] sm:$0xff] %v448_v41  ;;  %673 = vst [vmem:[%s1388_s19 + $0x248] sm:$0xff] %v449_v42  ;;  %v478_v40 = vsub.f32 %v1708_v8, %v1366_v18  ;;  %v479_v41 = vsub.f32 %v1708_v8, %v1369_v19  ;;  %v480_v42 = vsub.f32 %v1708_v8, %v1395_v29 }
  0x70   : > { %674 = vst [vmem:[%s1388_s19 + $0x250] sm:$0xff] %v450_v43  ;;  %675 = vst [vmem:[%s1388_s19 + $0x258] sm:$0xff] %v451_v44  ;;  %v481_v43 = vsub.f32 %v1708_v8, %v1398_v30  ;;  %v482_v44 = vsub.f32 %v1708_v8, %v1401_v31 }
  0x71   : > { %676 = vst [vmem:[%s1388_s19 + $0x260] sm:$0xff] %v452_v45  ;;  %677 = vst [vmem:[%s1388_s19 + $0x268] sm:$0xff] %v453_v54  ;;  %v483_v45 = vsub.f32 %v1708_v8, %v1404_v32  ;;  %v484_v54 = vsub.f32 %v1708_v8, %v1411_v33 }
  0x72   : > { %678 = vst [vmem:[%s1388_s19 + $0x270] sm:$0xff] %v454_v55  ;;  %679 = vst [vmem:[%s1388_s19 + $0x278] sm:$0xff] %v455_v56  ;;  %v485_v55 = vsub.f32 %v1708_v8, %v1414_v34  ;;  %v486_v56 = vsub.f32 %v1708_v8, %v1417_v35 }
  0x73   : > { %680 = vst [vmem:[%s1388_s19 + $0x280] sm:$0xff] %v456_v57  ;;  %681 = vst [vmem:[%s1388_s19 + $0x288] sm:$0xff] %v457_v58  ;;  %v487_v57 = vsub.f32 %v1708_v8, %v1420_v36  ;;  %v488_v58 = vsub.f32 %v1708_v8, %v1444_v46 }
  0x74   : > { %682 = vst [vmem:[%s1388_s19 + $0x290] sm:$0xff] %v458_v59  ;;  %683 = vst [vmem:[%s1388_s19 + $0x298] sm:$0xff] %v459_v60  ;;  %v489_v59 = vsub.f32 %v1708_v8, %v1447_v47  ;;  %v490_v60 = vsub.f32 %v1708_v8, %v1450_v48 }
  0x75   : > { %684 = vst [vmem:[%s1388_s19 + $0x2a0] sm:$0xff] %v460_v61  ;;  %685 = vst [vmem:[%s1388_s19 + $0x2a8] sm:$0xff] %v461_v62  ;;  %v491_v61 = vsub.f32 %v1708_v8, %v1453_v49  ;;  %v492_v62 = vsub.f32 %v1708_v8, %v1460_v50 }
  0x76   : > { %686 = vst [vmem:[%s1388_s19 + $0x2b0] sm:$0xff] %v462_v21  ;;  %687 = vst [vmem:[%s1388_s19 + $0x2b8] sm:$0xff] %v463_v7  ;;  %v493_v21 = vsub.f32 %v1708_v8, %v1463_v51  ;;  %v494_v7 = vsub.f32 %v1708_v8, %v1466_v52 }
  0x77   : > { %688 = vst [vmem:[%s1388_s19 + $0x2c0] sm:$0xff] %v464_v9  ;;  %689 = vst [vmem:[%s1388_s19 + $0x2c8] sm:$0xff] %v465_v22  ;;  %v495_v9 = vsub.f32 %v1708_v8, %v1469_v53  ;;  %v1806_v22 = vld [vmem:[#allocation2 + $0x20] sm:$0xff] }
  0x78   : > { %690 = vst [vmem:[%s1388_s19 + $0x2d0] sm:$0xff] %v466_v23  ;;  %691 = vst [vmem:[%s1388_s19 + $0x2d8] sm:$0xff] %v467_v24  ;;  %v496_v23 = vsub.f32 %v1708_v8, %v1493_v63  ;;  %v497_v24 = vsub.f32 %v1708_v8, %v1496_v0 }
  0x79   : > { %692 = vst [vmem:[%s1388_s19 + $0x2e0] sm:$0xff] %v468_v25  ;;  %693 = vst [vmem:[%s1388_s19 + $0x2e8] sm:$0xff] %v469_v26  ;;  %v498_v25 = vsub.f32 %v1708_v8, %v1499_v1  ;;  %v499_v26 = vsub.f32 %v1708_v8, %v1502_v11 }
  0x7a   : > { %694 = vst [vmem:[%s1388_s19 + $0x2f0] sm:$0xff] %v470_v27  ;;  %695 = vst [vmem:[%s1388_s19 + $0x2f8] sm:$0xff] %v471_v10  ;;  %v500_v27 = vsub.f32 %v1708_v8, %v1509_v20  ;;  %v501_v10 = vsub.f32 %v1708_v8, %v1512_v2 }
  0x7b   : > { %696 = vst [vmem:[%s1388_s19 + $0x300] sm:$0xff] %v472_v28  ;;  %697 = vst [vmem:[%s1388_s19 + $0x308] sm:$0xff] %v473_v5  ;;  %v502_v28 = vsub.f32 %v1708_v8, %v1515_v3  ;;  %v503_v5 = vsub.f32 %v1708_v8, %v1518_v4  ;;  %v507_v8 = vsub.f32 %v1806_v22, %v1357_v15 }
  0x7c   : > { %698 = vst [vmem:[%s1388_s19 + $0x310] sm:$0xff] %v474_v37  ;;  %699 = vst [vmem:[%s1388_s19 + $0x318] sm:$0xff] %v475_v6  ;;  %v504_v37 = vsub.f32 %v1806_v22, %v1348_v12  ;;  %v505_v6 = vsub.f32 %v1806_v22, %v1351_v13 }
  0x7d   : > { %700 = vst [vmem:[%s1388_s19 + $0x320] sm:$0xff] %v476_v38  ;;  %701 = vst [vmem:[%s1388_s19 + $0x328] sm:$0xff] %v477_v39  ;;  %v506_v38 = vsub.f32 %v1806_v22, %v1354_v14  ;;  %v508_v39 = vsub.f32 %v1806_v22, %v1360_v16 }
  0x7e   : > { %702 = vst [vmem:[%s1388_s19 + $0x330] sm:$0xff] %v478_v40  ;;  %703 = vst [vmem:[%s1388_s19 + $0x338] sm:$0xff] %v479_v41  ;;  %v509_v40 = vsub.f32 %v1806_v22, %v1363_v17  ;;  %v510_v41 = vsub.f32 %v1806_v22, %v1366_v18 }
  0x7f   : > { %704 = vst [vmem:[%s1388_s19 + $0x340] sm:$0xff] %v480_v42  ;;  %705 = vst [vmem:[%s1388_s19 + $0x348] sm:$0xff] %v481_v43  ;;  %v511_v42 = vsub.f32 %v1806_v22, %v1369_v19  ;;  %v512_v43 = vsub.f32 %v1806_v22, %v1395_v29 }
  0x80   : > { %706 = vst [vmem:[%s1388_s19 + $0x350] sm:$0xff] %v482_v44  ;;  %707 = vst [vmem:[%s1388_s19 + $0x358] sm:$0xff] %v483_v45  ;;  %v513_v44 = vsub.f32 %v1806_v22, %v1398_v30  ;;  %v514_v45 = vsub.f32 %v1806_v22, %v1401_v31 }
  0x81   : > { %708 = vst [vmem:[%s1388_s19 + $0x360] sm:$0xff] %v484_v54  ;;  %709 = vst [vmem:[%s1388_s19 + $0x368] sm:$0xff] %v485_v55  ;;  %v515_v54 = vsub.f32 %v1806_v22, %v1404_v32  ;;  %v516_v55 = vsub.f32 %v1806_v22, %v1411_v33 }
  0x82   : > { %710 = vst [vmem:[%s1388_s19 + $0x370] sm:$0xff] %v486_v56  ;;  %711 = vst [vmem:[%s1388_s19 + $0x378] sm:$0xff] %v487_v57  ;;  %v517_v56 = vsub.f32 %v1806_v22, %v1414_v34  ;;  %v518_v57 = vsub.f32 %v1806_v22, %v1417_v35 }
  0x83   : > { %712 = vst [vmem:[%s1388_s19 + $0x380] sm:$0xff] %v488_v58  ;;  %713 = vst [vmem:[%s1388_s19 + $0x388] sm:$0xff] %v489_v59  ;;  %v519_v58 = vsub.f32 %v1806_v22, %v1420_v36  ;;  %v520_v59 = vsub.f32 %v1806_v22, %v1444_v46 }
  0x84   : > { %714 = vst [vmem:[%s1388_s19 + $0x390] sm:$0xff] %v490_v60  ;;  %715 = vst [vmem:[%s1388_s19 + $0x398] sm:$0xff] %v491_v61  ;;  %v521_v60 = vsub.f32 %v1806_v22, %v1447_v47  ;;  %v522_v61 = vsub.f32 %v1806_v22, %v1450_v48 }
  0x85   : > { %716 = vst [vmem:[%s1388_s19 + $0x3a0] sm:$0xff] %v492_v62  ;;  %717 = vst [vmem:[%s1388_s19 + $0x3a8] sm:$0xff] %v493_v21  ;;  %v523_v62 = vsub.f32 %v1806_v22, %v1453_v49  ;;  %v524_v21 = vsub.f32 %v1806_v22, %v1460_v50 }
  0x86   : > { %718 = vst [vmem:[%s1388_s19 + $0x3b0] sm:$0xff] %v494_v7  ;;  %719 = vst [vmem:[%s1388_s19 + $0x3b8] sm:$0xff] %v495_v9  ;;  %v525_v7 = vsub.f32 %v1806_v22, %v1463_v51  ;;  %v526_v9 = vsub.f32 %v1806_v22, %v1466_v52 }
  0x87   : > { %720 = vst [vmem:[%s1388_s19 + $0x3c0] sm:$0xff] %v496_v23  ;;  %721 = vst [vmem:[%s1388_s19 + $0x3c8] sm:$0xff] %v497_v24  ;;  %v527_v23 = vsub.f32 %v1806_v22, %v1469_v53  ;;  %v1904_v24 = vld [vmem:[#allocation2 + $0x28] sm:$0xff] }
  0x88   : > { %722 = vst [vmem:[%s1388_s19 + $0x3d0] sm:$0xff] %v498_v25  ;;  %723 = vst [vmem:[%s1388_s19 + $0x3d8] sm:$0xff] %v499_v26  ;;  %v528_v25 = vsub.f32 %v1806_v22, %v1493_v63  ;;  %v529_v26 = vsub.f32 %v1806_v22, %v1496_v0 }
  0x89   : > { %724 = vst [vmem:[%s1388_s19 + $0x3e0] sm:$0xff] %v500_v27  ;;  %725 = vst [vmem:[%s1388_s19 + $0x3e8] sm:$0xff] %v501_v10  ;;  %v530_v27 = vsub.f32 %v1806_v22, %v1499_v1  ;;  %v531_v10 = vsub.f32 %v1806_v22, %v1502_v11 }
  0x8a   : > { %726 = vst [vmem:[%s1388_s19 + $0x3f0] sm:$0xff] %v502_v28  ;;  %727 = vst [vmem:[%s1388_s19 + $0x3f8] sm:$0xff] %v503_v5  ;;  %v532_v28 = vsub.f32 %v1806_v22, %v1509_v20  ;;  %v533_v5 = vsub.f32 %v1806_v22, %v1512_v2 }
  0x8b   : > { %728 = vst [vmem:[%s1388_s19 + $0x400] sm:$0xff] %v504_v37  ;;  %729 = vst [vmem:[%s1388_s19 + $0x408] sm:$0xff] %v505_v6  ;;  %v534_v37 = vsub.f32 %v1806_v22, %v1515_v3  ;;  %v535_v6 = vsub.f32 %v1806_v22, %v1518_v4  ;;  %v539_v22 = vsub.f32 %v1904_v24, %v1357_v15 }
  0x8c   : > { %730 = vst [vmem:[%s1388_s19 + $0x410] sm:$0xff] %v506_v38  ;;  %731 = vst [vmem:[%s1388_s19 + $0x418] sm:$0xff] %v507_v8  ;;  %v536_v38 = vsub.f32 %v1904_v24, %v1348_v12  ;;  %v537_v8 = vsub.f32 %v1904_v24, %v1351_v13 }
  0x8d   : > { %732 = vst [vmem:[%s1388_s19 + $0x420] sm:$0xff] %v508_v39  ;;  %733 = vst [vmem:[%s1388_s19 + $0x428] sm:$0xff] %v509_v40  ;;  %v538_v39 = vsub.f32 %v1904_v24, %v1354_v14  ;;  %v540_v40 = vsub.f32 %v1904_v24, %v1360_v16 }
  0x8e   : > { %734 = vst [vmem:[%s1388_s19 + $0x430] sm:$0xff] %v510_v41  ;;  %735 = vst [vmem:[%s1388_s19 + $0x438] sm:$0xff] %v511_v42  ;;  %v541_v41 = vsub.f32 %v1904_v24, %v1363_v17  ;;  %v542_v42 = vsub.f32 %v1904_v24, %v1366_v18 }
  0x8f   : > { %736 = vst [vmem:[%s1388_s19 + $0x440] sm:$0xff] %v512_v43  ;;  %737 = vst [vmem:[%s1388_s19 + $0x448] sm:$0xff] %v513_v44  ;;  %v543_v43 = vsub.f32 %v1904_v24, %v1369_v19  ;;  %v544_v44 = vsub.f32 %v1904_v24, %v1395_v29 }
  0x90   : > { %738 = vst [vmem:[%s1388_s19 + $0x450] sm:$0xff] %v514_v45  ;;  %739 = vst [vmem:[%s1388_s19 + $0x458] sm:$0xff] %v515_v54  ;;  %v545_v45 = vsub.f32 %v1904_v24, %v1398_v30  ;;  %v546_v54 = vsub.f32 %v1904_v24, %v1401_v31 }
  0x91   : > { %740 = vst [vmem:[%s1388_s19 + $0x460] sm:$0xff] %v516_v55  ;;  %741 = vst [vmem:[%s1388_s19 + $0x468] sm:$0xff] %v517_v56  ;;  %v547_v55 = vsub.f32 %v1904_v24, %v1404_v32  ;;  %v548_v56 = vsub.f32 %v1904_v24, %v1411_v33 }
  0x92   : > { %742 = vst [vmem:[%s1388_s19 + $0x470] sm:$0xff] %v518_v57  ;;  %743 = vst [vmem:[%s1388_s19 + $0x478] sm:$0xff] %v519_v58  ;;  %v549_v57 = vsub.f32 %v1904_v24, %v1414_v34  ;;  %v550_v58 = vsub.f32 %v1904_v24, %v1417_v35 }
  0x93   : > { %744 = vst [vmem:[%s1388_s19 + $0x480] sm:$0xff] %v520_v59  ;;  %745 = vst [vmem:[%s1388_s19 + $0x488] sm:$0xff] %v521_v60  ;;  %v551_v59 = vsub.f32 %v1904_v24, %v1420_v36  ;;  %v552_v60 = vsub.f32 %v1904_v24, %v1444_v46 }
  0x94   : > { %746 = vst [vmem:[%s1388_s19 + $0x490] sm:$0xff] %v522_v61  ;;  %747 = vst [vmem:[%s1388_s19 + $0x498] sm:$0xff] %v523_v62  ;;  %v553_v61 = vsub.f32 %v1904_v24, %v1447_v47  ;;  %v554_v62 = vsub.f32 %v1904_v24, %v1450_v48 }
  0x95   : > { %748 = vst [vmem:[%s1388_s19 + $0x4a0] sm:$0xff] %v524_v21  ;;  %749 = vst [vmem:[%s1388_s19 + $0x4a8] sm:$0xff] %v525_v7  ;;  %v555_v21 = vsub.f32 %v1904_v24, %v1453_v49  ;;  %v556_v7 = vsub.f32 %v1904_v24, %v1460_v50 }
  0x96   : > { %750 = vst [vmem:[%s1388_s19 + $0x4b0] sm:$0xff] %v526_v9  ;;  %751 = vst [vmem:[%s1388_s19 + $0x4b8] sm:$0xff] %v527_v23  ;;  %v557_v9 = vsub.f32 %v1904_v24, %v1463_v51  ;;  %v558_v23 = vsub.f32 %v1904_v24, %v1466_v52 }
  0x97   : > { %752 = vst [vmem:[%s1388_s19 + $0x4c0] sm:$0xff] %v528_v25  ;;  %753 = vst [vmem:[%s1388_s19 + $0x4c8] sm:$0xff] %v529_v26  ;;  %v559_v25 = vsub.f32 %v1904_v24, %v1469_v53  ;;  %v2002_v26 = vld [vmem:[#allocation2 + $0x30] sm:$0xff] }
  0x98   : > { %754 = vst [vmem:[%s1388_s19 + $0x4d0] sm:$0xff] %v530_v27  ;;  %755 = vst [vmem:[%s1388_s19 + $0x4d8] sm:$0xff] %v531_v10  ;;  %v560_v27 = vsub.f32 %v1904_v24, %v1493_v63  ;;  %v561_v10 = vsub.f32 %v1904_v24, %v1496_v0 }
  0x99   : > { %756 = vst [vmem:[%s1388_s19 + $0x4e0] sm:$0xff] %v532_v28  ;;  %757 = vst [vmem:[%s1388_s19 + $0x4e8] sm:$0xff] %v533_v5  ;;  %v562_v28 = vsub.f32 %v1904_v24, %v1499_v1  ;;  %v563_v5 = vsub.f32 %v1904_v24, %v1502_v11 }
  0x9a   : > { %758 = vst [vmem:[%s1388_s19 + $0x4f0] sm:$0xff] %v534_v37  ;;  %759 = vst [vmem:[%s1388_s19 + $0x4f8] sm:$0xff] %v535_v6  ;;  %v564_v37 = vsub.f32 %v1904_v24, %v1509_v20  ;;  %v565_v6 = vsub.f32 %v1904_v24, %v1512_v2 }
  0x9b   : > { %760 = vst [vmem:[%s1388_s19 + $0x500] sm:$0xff] %v536_v38  ;;  %761 = vst [vmem:[%s1388_s19 + $0x508] sm:$0xff] %v537_v8  ;;  %v566_v38 = vsub.f32 %v1904_v24, %v1515_v3  ;;  %v567_v8 = vsub.f32 %v1904_v24, %v1518_v4  ;;  %v571_v24 = vsub.f32 %v2002_v26, %v1357_v15 }
  0x9c   : > { %762 = vst [vmem:[%s1388_s19 + $0x510] sm:$0xff] %v538_v39  ;;  %763 = vst [vmem:[%s1388_s19 + $0x518] sm:$0xff] %v539_v22  ;;  %v568_v39 = vsub.f32 %v2002_v26, %v1348_v12  ;;  %v569_v22 = vsub.f32 %v2002_v26, %v1351_v13  ;;  %v572_v12 = vsub.f32 %v2002_v26, %v1360_v16 }
  0x9d   : > { %764 = vst [vmem:[%s1388_s19 + $0x520] sm:$0xff] %v540_v40  ;;  %765 = vst [vmem:[%s1388_s19 + $0x528] sm:$0xff] %v541_v41  ;;  %v570_v40 = vsub.f32 %v2002_v26, %v1354_v14  ;;  %v573_v13 = vsub.f32 %v2002_v26, %v1363_v17  ;;  %v574_v14 = vsub.f32 %v2002_v26, %v1366_v18 }
  0x9e   : > { %766 = vst [vmem:[%s1388_s19 + $0x530] sm:$0xff] %v542_v42  ;;  %767 = vst [vmem:[%s1388_s19 + $0x538] sm:$0xff] %v543_v43  ;;  %v575_v15 = vsub.f32 %v2002_v26, %v1369_v19  ;;  %v576_v16 = vsub.f32 %v2002_v26, %v1395_v29  ;;  %v577_v17 = vsub.f32 %v2002_v26, %v1398_v30 }
  0x9f   : > { %768 = vst [vmem:[%s1388_s19 + $0x540] sm:$0xff] %v544_v44  ;;  %769 = vst [vmem:[%s1388_s19 + $0x548] sm:$0xff] %v545_v45  ;;  %v578_v18 = vsub.f32 %v2002_v26, %v1401_v31  ;;  %v579_v19 = vsub.f32 %v2002_v26, %v1404_v32  ;;  %v580_v29 = vsub.f32 %v2002_v26, %v1411_v33 }
  0xa0   : > { %770 = vst [vmem:[%s1388_s19 + $0x550] sm:$0xff] %v546_v54  ;;  %771 = vst [vmem:[%s1388_s19 + $0x558] sm:$0xff] %v547_v55  ;;  %v581_v30 = vsub.f32 %v2002_v26, %v1414_v34  ;;  %v582_v31 = vsub.f32 %v2002_v26, %v1417_v35  ;;  %v583_v32 = vsub.f32 %v2002_v26, %v1420_v36 }
  0xa1   : > { %772 = vst [vmem:[%s1388_s19 + $0x560] sm:$0xff] %v548_v56  ;;  %773 = vst [vmem:[%s1388_s19 + $0x568] sm:$0xff] %v549_v57  ;;  %v584_v33 = vsub.f32 %v2002_v26, %v1444_v46  ;;  %v585_v34 = vsub.f32 %v2002_v26, %v1447_v47  ;;  %v586_v35 = vsub.f32 %v2002_v26, %v1450_v48 }
  0xa2   : > { %774 = vst [vmem:[%s1388_s19 + $0x570] sm:$0xff] %v550_v58  ;;  %775 = vst [vmem:[%s1388_s19 + $0x578] sm:$0xff] %v551_v59  ;;  %v587_v36 = vsub.f32 %v2002_v26, %v1453_v49  ;;  %v588_v46 = vsub.f32 %v2002_v26, %v1460_v50  ;;  %v589_v47 = vsub.f32 %v2002_v26, %v1463_v51 }
  0xa3   : > { %776 = vst [vmem:[%s1388_s19 + $0x580] sm:$0xff] %v552_v60  ;;  %777 = vst [vmem:[%s1388_s19 + $0x588] sm:$0xff] %v553_v61  ;;  %v590_v48 = vsub.f32 %v2002_v26, %v1466_v52  ;;  %v591_v49 = vsub.f32 %v2002_v26, %v1469_v53  ;;  %v592_v41 = vsub.f32 %v2002_v26, %v1493_v63 }
  0xa4   : > { %778 = vst [vmem:[%s1388_s19 + $0x590] sm:$0xff] %v554_v62  ;;  %779 = vst [vmem:[%s1388_s19 + $0x598] sm:$0xff] %v555_v21  ;;  %v593_v50 = vsub.f32 %v2002_v26, %v1496_v0  ;;  %v594_v51 = vsub.f32 %v2002_v26, %v1499_v1  ;;  %v595_v52 = vsub.f32 %v2002_v26, %v1502_v11 }
  0xa5   : > { %780 = vst [vmem:[%s1388_s19 + $0x5a0] sm:$0xff] %v556_v7  ;;  %781 = vst [vmem:[%s1388_s19 + $0x5a8] sm:$0xff] %v557_v9  ;;  %v596_v53 = vsub.f32 %v2002_v26, %v1509_v20  ;;  %v597_v63 = vsub.f32 %v2002_v26, %v1512_v2  ;;  %v598_v0 = vsub.f32 %v2002_v26, %v1515_v3 }
  0xa6   : > { %782 = vst [vmem:[%s1388_s19 + $0x5b0] sm:$0xff] %v558_v23  ;;  %783 = vst [vmem:[%s1388_s19 + $0x5b8] sm:$0xff] %v559_v25  ;;  %v599_v1 = vsub.f32 %v2002_v26, %v1518_v4 }
  0xa7   : > { %784 = vst [vmem:[%s1388_s19 + $0x5c0] sm:$0xff] %v560_v27  ;;  %785 = vst [vmem:[%s1388_s19 + $0x5c8] sm:$0xff] %v561_v10 }
  0xa8   : > { %786 = vst [vmem:[%s1388_s19 + $0x5d0] sm:$0xff] %v562_v28  ;;  %787 = vst [vmem:[%s1388_s19 + $0x5d8] sm:$0xff] %v563_v5 }
  0xa9   : > { %788 = vst [vmem:[%s1388_s19 + $0x5e0] sm:$0xff] %v564_v37  ;;  %789 = vst [vmem:[%s1388_s19 + $0x5e8] sm:$0xff] %v565_v6 }
  0xaa   : > { %790 = vst [vmem:[%s1388_s19 + $0x5f0] sm:$0xff] %v566_v38  ;;  %791 = vst [vmem:[%s1388_s19 + $0x5f8] sm:$0xff] %v567_v8 }
  0xab   : > { %792 = vst [vmem:[%s1388_s19 + $0x600] sm:$0xff] %v568_v39  ;;  %793 = vst [vmem:[%s1388_s19 + $0x608] sm:$0xff] %v569_v22 }
  0xac   : > { %794 = vst [vmem:[%s1388_s19 + $0x610] sm:$0xff] %v570_v40  ;;  %795 = vst [vmem:[%s1388_s19 + $0x618] sm:$0xff] %v571_v24 }
  0xad   : > { %796 = vst [vmem:[%s1388_s19 + $0x620] sm:$0xff] %v572_v12  ;;  %797 = vst [vmem:[%s1388_s19 + $0x628] sm:$0xff] %v573_v13 }
  0xae   : > { %798 = vst [vmem:[%s1388_s19 + $0x630] sm:$0xff] %v574_v14  ;;  %799 = vst [vmem:[%s1388_s19 + $0x638] sm:$0xff] %v575_v15 }
  0xaf   : > { %800 = vst [vmem:[%s1388_s19 + $0x640] sm:$0xff] %v576_v16  ;;  %801 = vst [vmem:[%s1388_s19 + $0x648] sm:$0xff] %v577_v17 }
  0xb0   : > { %802 = vst [vmem:[%s1388_s19 + $0x650] sm:$0xff] %v578_v18  ;;  %803 = vst [vmem:[%s1388_s19 + $0x658] sm:$0xff] %v579_v19 }
  0xb1   : > { %804 = vst [vmem:[%s1388_s19 + $0x660] sm:$0xff] %v580_v29  ;;  %805 = vst [vmem:[%s1388_s19 + $0x668] sm:$0xff] %v581_v30 }
  0xb2   : > { %806 = vst [vmem:[%s1388_s19 + $0x670] sm:$0xff] %v582_v31  ;;  %807 = vst [vmem:[%s1388_s19 + $0x678] sm:$0xff] %v583_v32 }
  0xb3   : > { %808 = vst [vmem:[%s1388_s19 + $0x680] sm:$0xff] %v584_v33  ;;  %809 = vst [vmem:[%s1388_s19 + $0x688] sm:$0xff] %v585_v34 }
  0xb4   : > { %810 = vst [vmem:[%s1388_s19 + $0x690] sm:$0xff] %v586_v35  ;;  %811 = vst [vmem:[%s1388_s19 + $0x698] sm:$0xff] %v587_v36 }
  0xb5   : > { %812 = vst [vmem:[%s1388_s19 + $0x6a0] sm:$0xff] %v588_v46  ;;  %813 = vst [vmem:[%s1388_s19 + $0x6a8] sm:$0xff] %v589_v47 }
  0xb6   : > { %814 = vst [vmem:[%s1388_s19 + $0x6b0] sm:$0xff] %v590_v48  ;;  %815 = vst [vmem:[%s1388_s19 + $0x6b8] sm:$0xff] %v591_v49 }
  0xb7   : > { %816 = vst [vmem:[%s1388_s19 + $0x6c0] sm:$0xff] %v592_v41  ;;  %817 = vst [vmem:[%s1388_s19 + $0x6c8] sm:$0xff] %v593_v50 }
  0xb8   : > { %818 = vst [vmem:[%s1388_s19 + $0x6d0] sm:$0xff] %v594_v51  ;;  %819 = vst [vmem:[%s1388_s19 + $0x6d8] sm:$0xff] %v595_v52 }
  0xb9   : > { %820 = vst [vmem:[%s1388_s19 + $0x6e0] sm:$0xff] %v596_v53  ;;  %821 = vst [vmem:[%s1388_s19 + $0x6e8] sm:$0xff] %v597_v63 }
  0xba   : > { %822 = vst [vmem:[%s1388_s19 + $0x6f0] sm:$0xff] %v598_v0  ;;  %823 = vst [vmem:[%s1388_s19 + $0x6f8] sm:$0xff] %v599_v1 }
  0xbb   : > { %1102 = shalt.err (!%p1099_p5)
}
  0xbc   : > { %s1103_s30 = scalar_lea.hbm %s2117_s24, 28672  ;;  %s1107_s7 = scalar_lea.hbm %s2189_s2, 57344 }
  0xbd   : > { %p1104_p7 = scmp.ne.s32.totalorder %s2117_s24, %s1103_s30  ;;  %p1108_p9 = scmp.lt.s32.totalorder %s2117_s24, %s2189_s2 }
  0xbe   : > { %p1109_p11 = scmp.lt.s32.totalorder %s1107_s7, %s1103_s30 }
  0xbf   : > { %p1105_p6 = pnand %p1104_p7, %p1285_p13 }
  0xc0   : > { %p1110_p10 = por %p1109_p11, %p1108_p9 }
  0xc1   : > { %p1106_p4 = pneg %p1105_p6 }
  0xc3   : > { %p1111_p1 = pnand %p1110_p10, %p1106_p4 }
  0xc5   : > { %1114 = shalt.err (!%p1111_p1)
}
  0xc6   : > { %s1180_s17 = smov 4096   ;;  %s1181_s19 = smov 8192  }
  0xc7   : > { %s1182_s21 = smov 256  }
  0xc8   : > { %963 = dma.vmem_to_hbm [thread:$0]  (%p1285_p13), %s2131_s12, 28672, %s2117_s24, %s825_s26, %s1180_s17, %s1181_s19, %s1182_s21  }
  0xc9 PF: > { %s856_s22 = sand.u32 1, %s1153_s9   ;;  %p2201_p8 = scmp.ne.s32.totalorder %s2194_s20, 0 }
  0xca   : > { %p2202_p12 = scmp.ge.s32.totalorder %s1173_s14, 2  ;;  %s857_s23 = scalar_lea.sflag [#allocation4], %s856_s22 }
  0xcc   : > { %p974_p0 = pnand %p2202_p12, %p2201_p8 }
  0xce   : > { %p975_p2 = pneg %p974_p0 }
  0xd0   : > { %1148 = dma.done.wait (%p975_p2), %s857_s23, 28672  }
  0xd1   : > { %1150 = vsyncadd (%p975_p2), %s857_s23, 4294938624  ;;  %s19_s14 = sadd.s32 1, %s1173_s14   ;;  %s2203_s9 = smov %s1157_s10 }
  0xd2   : > { %p16_p3 = scmp.ge.s32.totalorder %s19_s14, 4   ;;  %s2204_s10 = smov %s1161_s11 }
  0xd3   : > { %s2205_s11 = smov %s1294_s15  ;;  %s2206_s12 = smov %s1169_s13 }
  0xd4   : > { %s2207_s13 = smov %s2209_s25  ;;  %18 = sbr.rel (!%p16_p3) target bundleno = 7 (0x7), region = 79 }
  0xd9   :  { %862 = vsyncpa [#allocation3], 1 }
  0xda   :  { %864 = vsyncpa [#allocation3 + $0x1], 1 }
  0xdb   :  { %865 = vsyncpa [#allocation6], 1 }
  0xdc   :  { %867 = vsyncpa [#allocation6 + $0x1], 1 }
  0xdd   :  { %868 = vsyncpa [#allocation4], 1 }
  0xde   :  { %870 = vsyncpa [#allocation4 + $0x1], 1 }

</bundles_post_ra>
